<compile_context>
chip_gen: v7x
topology: tpu7x:2x2x1
jax: 0.10.0
libtpu: 0.0.40
codegen_flags: <defaults>
</compile_context>

<pallas_src>
import functools

import jax
import jax.numpy as jnp
from jax.experimental import pallas as pl
from jax.experimental.pallas import tpu as pltpu


def _round_up(x, m):
    return (x + m - 1) // m * m


def _pick_tile_n(h_out_pad, h_in, cap_bytes=8 * 1024 * 1024):
    """Largest multiple of 128 dividing h_out_pad with the stacked bf16 weight
    block (2, h_in, tile_n) under cap_bytes."""
    max_tn = max(128, cap_bytes // (2 * h_in * 2))  # 2 (stack) * 2 B (bf16)
    max_tn = min(max_tn, h_out_pad)
    tn = max(128, (max_tn // 128) * 128)
    while h_out_pad % tn != 0:
        tn -= 128
    return tn


def _glu_kernel(x_ref, w_ref, b_ref, o_ref):
    x = x_ref[...]
    # Two lane-aligned MXU matmuls driving both projections; f32 accumulation.
    proc = jnp.dot(x, w_ref[0], preferred_element_type=jnp.float32)
    gate = jnp.dot(x, w_ref[1], preferred_element_type=jnp.float32)
    proc = proc + b_ref[0]                       # bias kept in f32 (VPU)
    gate = gate + b_ref[1]
    # sigmoid -> EUP, gating multiply -> VPU, single cast at the end.
    o_ref[...] = (proc * jax.nn.sigmoid(gate)).astype(o_ref.dtype)


def any_glu_linear(x, w_t, b, wg_t, bg, *, tile_m=512,
                   compute_dtype=jnp.bfloat16):
    """anyGLU(nn.Linear): out = (x @ W.T + b) * sigmoid(x @ Wg.T + bg).

    x:        (B, S, H_in)
    w_t/wg_t: (H_in, H_out)   (transposed nn.Linear weights)
    b/bg:     (1, H_out)
    """
    B, S, H_in = x.shape
    H_out = w_t.shape[1]
    M = B * S

    # --- Pad the output feature dim to a lane multiple (128). ---------------
    H_out_pad = _round_up(H_out, 128)
    if H_out_pad != H_out:
        pad_n = H_out_pad - H_out
        w_t = jnp.pad(w_t, ((0, 0), (0, pad_n)))
        wg_t = jnp.pad(wg_t, ((0, 0), (0, pad_n)))
        b = jnp.pad(b, ((0, 0), (0, pad_n)))
        bg = jnp.pad(bg, ((0, 0), (0, pad_n)))

    # Stack (not concat) the two projections: lane-aligned split for free.
    w_stacked = jnp.stack([w_t, wg_t], axis=0).astype(compute_dtype)  # (2,H_in,Hp)
    b_stacked = jnp.stack([b, bg], axis=0).astype(jnp.float32)        # (2,1,Hp)

    # --- Row tiling: pick a tile, pad M so the grid divides evenly. ---------
    tile_m = max(8, min(tile_m, _round_up(M, 8)))
    m_pad = _round_up(M, tile_m)

    x2d = x.reshape(M, H_in).astype(compute_dtype)
    if m_pad != M:
        x2d = jnp.pad(x2d, ((0, m_pad - M), (0, 0)))

    # --- Column tiling: bound weight-block VMEM residency. ------------------
    tile_n = _pick_tile_n(H_out_pad, H_in)

    # n-tiles outer, m-tiles inner: weight block index is constant across the
    # inner loop -> each weight tile DMA'd from HBM exactly once.
    grid = (H_out_pad // tile_n, m_pad // tile_m)

    out2d = pl.pallas_call(
        _glu_kernel,
        out_shape=jax.ShapeDtypeStruct((m_pad, H_out_pad), x.dtype),
        grid_spec=pltpu.PrefetchScalarGridSpec(
            num_scalar_prefetch=0,
            grid=grid,
            in_specs=[
                # x: row-tiled, streamed/double-buffered across the inner axis.
                pl.BlockSpec((tile_m, H_in), lambda j, i: (i, 0)),
                # stacked weight / bias: constant across inner axis -> resident.
                pl.BlockSpec((2, H_in, tile_n), lambda j, i: (0, 0, j)),
                pl.BlockSpec((2, 1, tile_n), lambda j, i: (0, 0, j)),
            ],
            out_specs=pl.BlockSpec((tile_m, tile_n), lambda j, i: (i, j)),
        ),
        compiler_params=pltpu.CompilerParams(
            # Independent tiles on both axes: shardable across v7x's two TCs.
            dimension_semantics=("parallel", "parallel"),
            # Above the 16/32 MiB scoped defaults, headroom under v7x's 64 MiB.
            vmem_limit_bytes=48 * 1024 * 1024,
        ),
    )(x2d, w_stacked, b_stacked)

    out2d = out2d[:M, :H_out]
    return out2d.reshape(B, S, H_out)


def _check(B, S, H, key):
    kx, kw, kb, kwg, kbg = jax.random.split(key, 5)
    x = jax.random.normal(kx, (B, S, H), dtype=jnp.float32)

    # Deterministic "nn.Linear"-shaped parameters (PyTorch weight is (out,in);
    # we store the transpose (in,out)).
    scale = 1.0 / jnp.sqrt(H)
    w_t = (jax.random.uniform(kw, (H, H), dtype=jnp.float32) * 2 - 1) * scale
    b = (jax.random.uniform(kb, (1, H), dtype=jnp.float32) * 2 - 1) * scale
    wg_t = (jax.random.uniform(kwg, (H, H), dtype=jnp.float32) * 2 - 1) * scale
    bg = (jax.random.uniform(kbg, (1, H), dtype=jnp.float32) * 2 - 1) * scale

    out = any_glu_linear(x, w_t, b, wg_t, bg)
    jax.block_until_ready(out)
    assert out.shape == (B, S, H)

    # Reference 1: same bf16-rounded operands, f32 accumulate (matched math).
    xb = x.astype(jnp.bfloat16).astype(jnp.float32)
    wb = w_t.astype(jnp.bfloat16).astype(jnp.float32)
    wgb = wg_t.astype(jnp.bfloat16).astype(jnp.float32)
    ref_matched = (xb @ wb + b[0]) * jax.nn.sigmoid(xb @ wgb + bg[0])
    assert jnp.allclose(out, ref_matched, atol=1e-2, rtol=1e-2)

    # Reference 2: full-f32 PyTorch semantics (loose tolerance from bf16
    # matmul operands in the kernel).
    ref_f32 = (x @ w_t + b[0]) * jax.nn.sigmoid(x @ wg_t + bg[0])
    assert jnp.allclose(out, ref_f32, atol=5e-2, rtol=5e-2)


if __name__ == "__main__":
    key = jax.random.PRNGKey(0)
    k1, k2 = jax.random.split(key)

    # Small shapes consistent with the module: batch=2, seq=8, hidden=32.
    _check(B=2, S=8, H=32, key=k1)

    # Exercise the padding paths: M not a tile multiple, H not a lane multiple.
    _check(B=2, S=19, H=96, key=k2)

    print("KERNEL_OK")
</pallas_src>

<mosaic_0001>
module attributes {stable_mosaic.version = 11 : i64} {
  func.func @_glu_kernel(%arg0: i32, %arg1: i32, %arg2: memref<16x32xbf16, #tpu.memory_space<vmem>>, %arg3: memref<2x32x128xbf16, #tpu.memory_space<vmem>>, %arg4: memref<2x1x128xf32, #tpu.memory_space<vmem>>, %arg5: memref<16x128xf32, #tpu.memory_space<vmem>>) attributes {dimension_semantics = [#tpu.dimension_semantics<parallel>, #tpu.dimension_semantics<parallel>], iteration_bounds = array<i64: 1, 1>, scalar_prefetch = 0 : i64, scratch_operands = 0 : i64, tpu.core_type = #tpu.core_type<tc>, window_params = [{transform_indices = @transform_0, window_bounds = array<i64: 16, 32>}, {transform_indices = @transform_1, window_bounds = array<i64: 2, 32, 128>}, {transform_indices = @transform_2, window_bounds = array<i64: 2, 1, 128>}, {transform_indices = @transform_3, window_bounds = array<i64: 16, 128>}]} {
    %c0 = arith.constant 0 : index
    %c0_0 = arith.constant 0 : index
    %0 = vector.load %arg2[%c0, %c0_0] : memref<16x32xbf16, #tpu.memory_space<vmem>>, vector<16x32xbf16>
    %c0_1 = arith.constant 0 : index
    %c0_2 = arith.constant 0 : index
    %c0_3 = arith.constant 0 : index
    %1 = vector.load %arg3[%c0_1, %c0_2, %c0_3] : memref<2x32x128xbf16, #tpu.memory_space<vmem>>, vector<1x32x128xbf16>
    %2 = vector.shape_cast %1 : vector<1x32x128xbf16> to vector<32x128xbf16>
    %cst = arith.constant dense<0.000000e+00> : vector<16x128xf32>
    %3 = tpu.matmul %0, %2, %cst {dimension_numbers = #tpu.dot_dimension_numbers<[1], [0], [0], [1], [0, 0, 1, 1], [], []>} : vector<16x32xbf16>, vector<32x128xbf16>, vector<16x128xf32> -> vector<16x128xf32>
    %c1 = arith.constant 1 : index
    %c0_4 = arith.constant 0 : index
    %c0_5 = arith.constant 0 : index
    %4 = vector.load %arg3[%c1, %c0_4, %c0_5] : memref<2x32x128xbf16, #tpu.memory_space<vmem>>, vector<1x32x128xbf16>
    %5 = vector.shape_cast %4 : vector<1x32x128xbf16> to vector<32x128xbf16>
    %cst_6 = arith.constant dense<0.000000e+00> : vector<16x128xf32>
    %6 = tpu.matmul %0, %5, %cst_6 {dimension_numbers = #tpu.dot_dimension_numbers<[1], [0], [0], [1], [0, 0, 1, 1], [], []>} : vector<16x32xbf16>, vector<32x128xbf16>, vector<16x128xf32> -> vector<16x128xf32>
    %c0_7 = arith.constant 0 : index
    %c0_8 = arith.constant 0 : index
    %c0_9 = arith.constant 0 : index
    %7 = vector.load %arg4[%c0_7, %c0_8, %c0_9] : memref<2x1x128xf32, #tpu.memory_space<vmem>>, vector<1x1x128xf32>
    %8 = vector.shape_cast %7 : vector<1x1x128xf32> to vector<1x128xf32>
    %9 = vector.broadcast %8 : vector<1x128xf32> to vector<16x128xf32>
    %10 = arith.addf %3, %9 : vector<16x128xf32>
    %c1_10 = arith.constant 1 : index
    %c0_11 = arith.constant 0 : index
    %c0_12 = arith.constant 0 : index
    %11 = vector.load %arg4[%c1_10, %c0_11, %c0_12] : memref<2x1x128xf32, #tpu.memory_space<vmem>>, vector<1x1x128xf32>
    %12 = vector.shape_cast %11 : vector<1x1x128xf32> to vector<1x128xf32>
    %13 = vector.broadcast %12 : vector<1x128xf32> to vector<16x128xf32>
    %14 = arith.addf %6, %13 : vector<16x128xf32>
    %15 = arith.negf %14 : vector<16x128xf32>
    %16 = math.exp %15 : vector<16x128xf32>
    %cst_13 = arith.constant 1.000000e+00 : f32
    %17 = vector.broadcast %cst_13 : f32 to vector<16x128xf32>
    %18 = arith.addf %17, %16 : vector<16x128xf32>
    %19 = arith.divf %17, %18 : vector<16x128xf32>
    %20 = arith.mulf %10, %19 : vector<16x128xf32>
    %c0_14 = arith.constant 0 : index
    %c0_15 = arith.constant 0 : index
    %21 = vector.load %arg5[%c0_14, %c0_15] : memref<16x128xf32, #tpu.memory_space<vmem>>, vector<16x128xf32>
    tpu.vector_store %arg5[%c0_14, %c0_15], %20 {strides = array<i32>} : memref<16x128xf32, #tpu.memory_space<vmem>>, vector<16x128xf32>,
    return
  }
  func.func @transform_0(%arg0: i32, %arg1: i32) -> (i32, i32) {
    %c0_i32 = arith.constant 0 : i32
    %c0_i32_0 = arith.constant 0 : i32
    return %arg1, %c0_i32 : i32, i32
  }
  func.func @transform_1(%arg0: i32, %arg1: i32) -> (i32, i32, i32) {
    %c0_i32 = arith.constant 0 : i32
    %c0_i32_0 = arith.constant 0 : i32
    %c0_i32_1 = arith.constant 0 : i32
    return %c0_i32, %c0_i32_0, %arg0 : i32, i32, i32
  }
  func.func @transform_2(%arg0: i32, %arg1: i32) -> (i32, i32, i32) {
    %c0_i32 = arith.constant 0 : i32
    %c0_i32_0 = arith.constant 0 : i32
    %c0_i32_1 = arith.constant 0 : i32
    return %c0_i32, %c0_i32_0, %arg0 : i32, i32, i32
  }
  func.func @transform_3(%arg0: i32, %arg1: i32) -> (i32, i32) {
    %c0_i32 = arith.constant 0 : i32
    return %arg1, %arg0 : i32, i32
  }
}

</mosaic_0001>

<bundles_post_ra>
// kernel: tpu_custom_call.1
= control target key start
LH: loop header
LB: loop body
LE: loop exit
PB: predicated region body
PF: predicated region fallthrough
CT: control target
= control target key end

     0   :  { %8 = vsyncpa [#allocation3], 0  ;;  %s418_s0 = inlined_call_operand.hbm [shape: bf16[16,32], index: 0, kind: input, shape index: {}]   ;;  %s419_s1 = inlined_call_operand.hbm [shape: bf16[2,32,128], index: 1, kind: input, shape index: {}]   ;;  %s420_s2 = inlined_call_operand.vmem [shape: f32[2,1,128], index: 2, kind: input, shape index: {}]   ;;  %s421_s3 = inlined_call_operand.hbm [shape: f32[16,128], index: 3, kind: output, shape index: {}]  }
   0x1   :  { %9 = vsyncpa [#allocation6], 0 }
   0x2   :  { %10 = vsyncpa [#allocation4], 0  ;;  %s347_s12 = smov [#allocation2]   ;;  %s275_s16 = scalar_lea.hbm %s418_s0, 128 }
   0x3   :  { %s16_s13 = sshll.u32 %s347_s12, 4  ;;  %p276_p0 = scmp.ne.s32.totalorder %s418_s0, %s275_s16  ;;  %s17_s13 = int_to_ptr.vmem [resolvable:$true] %s16_s13 }
   0x4   :  { %p279_p1 = scmp.lt.u32.totalorder %s275_s16, %s418_s0 }
   0x6   :  { %p281_p2 = pnand %p279_p1, %p276_p0 }
   0x8   :  { %284 = shalt.err (!%p281_p2)
}
   0x9   :  { %s285_s21 = scalar_lea.vmem %s17_s13, 128  ;;  %p290_p4 = scmp.lt.s32.totalorder %s17_s13, %s17_s13 }
   0xa   :  { %p286_p3 = scmp.ne.s32.totalorder %s17_s13, %s285_s21  ;;  %p291_p5 = scmp.lt.s32.totalorder %s285_s21, %s285_s21 }
   0xc   :  { %p292_p6 = por %p291_p5, %p290_p4 }
   0xe   :  { %p293_p7 = pnand %p292_p6, %p286_p3 }
  0x10   :  { %296 = shalt.err (!%p293_p7)
}
  0x11   :  { %s348_s22 = smov 64   ;;  %s349_s23 = smov 4  }
  0x12   :  { %22 = dma.hbm_to_vmem [thread:$0]  %s418_s0, 128, %s17_s13, [#allocation3], %s348_s22, %s348_s22, %s349_s23  }
  0x13   :  { %s350_s26 = smov [#allocation5]   ;;  %s297_s30 = scalar_lea.hbm %s419_s1, 512 }
  0x14   :  { %s28_s27 = sshll.u32 %s350_s26, 4  ;;  %p298_p8 = scmp.ne.s32.totalorder %s419_s1, %s297_s30  ;;  %s29_s27 = int_to_ptr.vmem [resolvable:$true] %s28_s27 }
  0x15   :  { %p301_p9 = scmp.lt.u32.totalorder %s297_s30, %s419_s1 }
  0x17   :  { %p303_p10 = pnand %p301_p9, %p298_p8 }
  0x19   :  { %306 = shalt.err (!%p303_p10)
}
  0x1a   :  { %s307_s8 = scalar_lea.vmem %s29_s27, 512  ;;  %p312_p12 = scmp.lt.s32.totalorder %s29_s27, %s29_s27 }
  0x1b   :  { %p308_p11 = scmp.ne.s32.totalorder %s29_s27, %s307_s8  ;;  %p313_p13 = scmp.lt.s32.totalorder %s307_s8, %s307_s8 }
  0x1d   :  { %p314_p0 = por %p313_p13, %p312_p12 }
  0x1f   :  { %p315_p1 = pnand %p314_p0, %p308_p11 }
  0x21   :  { %318 = shalt.err (!%p315_p1)
}
  0x22   :  { %34 = dma.hbm_to_vmem [thread:$0]  %s419_s1, 512, %s29_s27, [#allocation6], %s348_s22, %s348_s22, %s349_s23  }
  0x23   :  { %341 = dma.done.wait [#allocation3], 128  }
  0x24   :  { %342 = vsyncadd [#allocation3], 4294967168 }
  0x25   :  { %343 = dma.done.wait [#allocation6], 512  }
  0x26   :  { %344 = vsyncadd [#allocation6], 4294966784  ;;  %v351_v0 = vmov 0.0   ;;  %vm352_vm0 = vmmov 0   ;;  %v262_v1 = vld [vmem:[#allocation5 + $0x10] sm:$0xff]   ;;  %v263_v2 = vld [vmem:[#allocation5 + $0x18] sm:$0xff]  }
  0x27   :  { %245 = vmatprep.subr.bf16.mxu1 %v351_v0  ;;  %249 = vmatprep.mubr.msk.bf16.mxu1 %vm352_vm0, %v351_v0  ;;  %v265_v3 = vld [vmem:[#allocation5] sm:$0xff]   ;;  %v264_v4 = vld [vmem:[#allocation2] sm:$0xff]   ;;  %v266_v5 = vld [vmem:[#allocation5 + $0x8] sm:$0xff]   ;;  %vm79_vm1 = vcmask 261120   ;;  %s353_s13 = smov [#allocation7]  }
  0x28   :  { %237 = vmatprep.subr.bf16.mxu0 %v351_v0  ;;  %241 = vmatprep.mubr.msk.bf16.mxu0 %vm352_vm0, %v351_v0  ;;  %v225_v6 = vld [vmem:[%s420_s2 + $0x1] ss:$0 sm:$0xff]  ;;  %v219_v23 = vld [vmem:[%s420_s2] ss:$0 sm:$0xff]  ;;  %s206_s14 = sshll.u32 %s353_s13, 4  ;;  %s207_s14 = int_to_ptr.vmem [resolvable:$true] %s206_s14 }
  0x29   :  { %246 = vmatpush3.bf16.msra.mxu1 %v262_v1  ;;  %238 = vmatpush3.bf16.msra.mxu0 %v265_v3  ;;  %s319_s15 = scalar_lea.vmem %s207_s14, 256  ;;  %p324_p3 = scmp.lt.s32.totalorder %s207_s14, %s207_s14 }
  0x2a   :  { %247 = vmatprep.subr.bf16.mxu1 %v351_v0  ;;  %239 = vmatprep.subr.bf16.mxu0 %v351_v0  ;;  %p320_p2 = scmp.ne.s32.totalorder %s207_s14, %s319_s15  ;;  %p325_p4 = scmp.lt.s32.totalorder %s319_s15, %s319_s15 }
  0x2c   :  { %p326_p5 = por %p325_p4, %p324_p3 }
  0x2d   :  { %248 = vmatpush3.bf16.msra.mxu1 %v263_v2  ;;  %240 = vmatpush3.bf16.msra.mxu0 %v266_v5 }
  0x2e   :  { %p327_p6 = pnand %p326_p5, %p320_p2 }
  0x30   :  { %250 = vmatmul.mubr.msk.bf16.vlgmr.msra.gmra.mrb[0].mxu1 %vm79_vm1, %v264_v4  ;;  %242 = vmatmul.mubr.msk.bf16.vlgmr.msra.gmra.mrb[0].mxu0 %vm79_vm1, %v264_v4 }
 0x103   :  { %v178_v7 = vpop.f32.mrb[0].mxu1  ;;  %v117_v14 = vpop.f32.mrb[0].mxu0 }
 0x104   :  { %v179_v8 = vadd.f32 %v225_v6, %v178_v7  ;;  %v251_v9 = vpop.f32.mrb[1].mxu1  ;;  %v243_v15 = vpop.f32.mrb[1].mxu0  ;;  %v118_v24 = vadd.f32 %v219_v23, %v117_v14 }
 0x105   :  { %v181_v10 = vpop.f32.mrb[2].mxu1  ;;  %v120_v17 = vpop.f32.mrb[2].mxu0 }
 0x106   :  { %v229_v11 = vmul.f32 -1.442695, %v179_v8  ;;  %v182_v12 = vadd.f32 %v225_v6, %v181_v10  ;;  %v252_v13 = vpop.f32.mrb[3].mxu1  ;;  %v244_v18 = vpop.f32.mrb[3].mxu0  ;;  %v121_v27 = vadd.f32 %v219_v23, %v120_v17 }
 0x108   :  { %267 = vpow2.f32 %v229_v11  ;;  %v230_v16 = vmul.f32 -1.442695, %v182_v12 }
 0x10a   :  { %269 = vpow2.f32 %v230_v16 }
 0x112   :  { %v268_v19 = vpop.eup %267 }
 0x113   :  { %v191_v20 = vadd.f32 1.0, %v268_v19 }
 0x114   :  { %v270_v21 = vpop.eup %269 }
 0x115   :  { %271 = vrcp.f32 %v191_v20  ;;  %v192_v22 = vadd.f32 1.0, %v270_v21 }
 0x117   :  { %273 = vrcp.f32 %v192_v22 }
 0x11f   :  { %v272_v25 = vpop.eup %271 }
 0x120   :  { %v197_v26 = vmul.f32 %v272_v25, %v118_v24 }
 0x121   :  { %v274_v28 = vpop.eup %273 }
 0x122   :  { %199 = vst [vmem:[#allocation7] sm:$0xff] %v197_v26  ;;  %v198_v29 = vmul.f32 %v274_v28, %v121_v27 }
 0x124   :  { %200 = vst [vmem:[#allocation7 + $0x8] sm:$0xff] %v198_v29 }
 0x125   :  { %330 = shalt.err (!%p327_p6)
}
 0x126   :  { %s331_s17 = scalar_lea.hbm %s421_s3, 256 }
 0x127   :  { %p332_p7 = scmp.ne.s32.totalorder %s421_s3, %s331_s17  ;;  %p335_p8 = scmp.lt.u32.totalorder %s331_s17, %s421_s3 }
 0x129   :  { %p337_p9 = pnand %p335_p8, %p332_p7 }
 0x12b   :  { %340 = shalt.err (!%p337_p9)
}
 0x12c   :  { %s354_s22 = smov 128   ;;  %s355_s23 = smov 8  }
 0x12d   :  { %212 = dma.vmem_to_hbm [thread:$0]  %s207_s14, 256, %s421_s3, [#allocation4], %s354_s22, %s354_s22, %s355_s23  }
 0x12e   :  { %345 = dma.done.wait [#allocation4], 256  }
 0x12f   :  { %346 = vsyncadd [#allocation4], 4294967040 }
 0x130   :  { %216 = vsyncpa [#allocation3], 1 }
 0x131   :  { %217 = vsyncpa [#allocation6], 1 }
 0x132   :  { %218 = vsyncpa [#allocation4], 1 }

</bundles_post_ra>
